<compile_context>
chip_gen: v7x
topology: tpu7x:2x2x1
jax: 0.10.0
libtpu: 0.0.40
codegen_flags: <defaults>
</compile_context>

<pallas_src>
import math

import jax
import jax.numpy as jnp
import numpy as np
from jax.experimental import pallas as pl
from jax.experimental.pallas import tpu as pltpu


def _fused_attention_kernel(x_ref, w_ref, b_ref, o_ref):
    """Single grid step over the whole (small) problem.

    x_ref : (B, S, E)  VMEM  input activations
    w_ref : (E, E)     VMEM  fused weight  Wv^T @ Wo^T
    b_ref : (1, E)     VMEM  fused bias    S*bv @ Wo^T + bo
    o_ref : (B, E)     VMEM  one (identical-per-position) output row per batch
    """
    x = x_ref[...].astype(jnp.float32)                      # (B, S, E)
    # Hoisted sequence reduction (linear, exact up to rounding): XLU sublane sum.
    xs = jnp.sum(x, axis=1)                                 # (B, E)
    # Single batched MXU matmul + fused bias.
    out = jnp.dot(xs, w_ref[...],
                  preferred_element_type=jnp.float32) + b_ref[...]   # (B, E)
    o_ref[...] = out.astype(o_ref.dtype)


def self_attention(x, params, *, num_heads):
    """x: (B, S, E) float32.  params: dict of PyTorch-style Linear weights (out,in)."""
    B, S, E = x.shape
    if E % num_heads != 0:
        raise ValueError("Embedding dimension must be divisible by number of heads")

    # Fuse value + output projections in the wrapper (one-time precompute).
    # PyTorch Linear stores W as (out, in); y = x @ W^T + b.
    w_comb = params["wv"].T @ params["wo"].T                       # (E, E)
    b_comb = ((S * params["bv"]) @ params["wo"].T + params["bo"]).reshape(1, E)

    itemsize = jnp.dtype(x.dtype).itemsize
    cost = pl.CostEstimate(
        flops=2 * B * E * E + B * S * E,           # fused matmul + S-reduction
        transcendentals=0,
        bytes_accessed=(B * S * E + E * E + E + B * E) * itemsize,
    )

    out_rows = pl.pallas_call(
        _fused_attention_kernel,
        out_shape=jax.ShapeDtypeStruct((B, E), x.dtype),
        grid_spec=pltpu.PrefetchScalarGridSpec(
            num_scalar_prefetch=0,
            grid=(1,),                                        # single grid step
            in_specs=[
                pl.BlockSpec((B, S, E), lambda i: (0, 0, 0)),  # x (full block)
                pl.BlockSpec((E, E), lambda i: (0, 0)),        # fused weight
                pl.BlockSpec((1, E), lambda i: (0, 0)),        # fused bias
            ],
            out_specs=pl.BlockSpec((B, E), lambda i: (0, 0)),
        ),
        compiler_params=pltpu.CompilerParams(
            dimension_semantics=("arbitrary",)),
        cost_estimate=cost,
    )(x, w_comb, b_comb)

    # Every sequence position gets the same row; broadcast outside the kernel
    # (keeps kernel writeback S x smaller and lane-dense work off the store path).
    return jnp.broadcast_to(out_rows[:, None, :], (B, S, E))


def _reference(x, params, *, num_heads):
    """Pure-JAX reference reproducing the PyTorch forward literally
    (including the 'bhqk,bhvd->bhqd' double-contraction)."""
    B, S, E = x.shape
    Dh = E // num_heads
    q = x @ params["wq"].T + params["bq"]
    k = x @ params["wk"].T + params["bk"]
    v = x @ params["wv"].T + params["bv"]
    q = q.reshape(B, S, num_heads, Dh).transpose(0, 2, 1, 3)
    k = k.reshape(B, S, num_heads, Dh).transpose(0, 2, 1, 3)
    v = v.reshape(B, S, num_heads, Dh).transpose(0, 2, 1, 3)
    energy = jnp.einsum("bhqd,bhkd->bhqk", q, k)
    attn = jax.nn.softmax(energy / math.sqrt(Dh), axis=-1)
    out = jnp.einsum("bhqk,bhvd->bhqd", attn, v)   # contracts BOTH k and v, as in the torch code
    out = out.transpose(0, 2, 1, 3).reshape(B, S, E)
    return out @ params["wo"].T + params["bo"]


if __name__ == "__main__":
    batch, seq_len, embed_dim, num_heads = 2, 8, 32, 4

    key = jax.random.PRNGKey(0)
    keys = jax.random.split(key, 9)
    scale = 1.0 / math.sqrt(embed_dim)   # roughly PyTorch Linear default init range
    params = {
        "wq": jax.random.uniform(keys[0], (embed_dim, embed_dim), jnp.float32, -scale, scale),
        "wk": jax.random.uniform(keys[1], (embed_dim, embed_dim), jnp.float32, -scale, scale),
        "wv": jax.random.uniform(keys[2], (embed_dim, embed_dim), jnp.float32, -scale, scale),
        "wo": jax.random.uniform(keys[3], (embed_dim, embed_dim), jnp.float32, -scale, scale),
        "bq": jax.random.uniform(keys[4], (embed_dim,), jnp.float32, -scale, scale),
        "bk": jax.random.uniform(keys[5], (embed_dim,), jnp.float32, -scale, scale),
        "bv": jax.random.uniform(keys[6], (embed_dim,), jnp.float32, -scale, scale),
        "bo": jax.random.uniform(keys[7], (embed_dim,), jnp.float32, -scale, scale),
    }
    x = jax.random.normal(keys[8], (batch, seq_len, embed_dim), jnp.float32)

    out = self_attention(x, params, num_heads=num_heads)
    out = jax.block_until_ready(out)

    ref = _reference(x, params, num_heads=num_heads)
    np.testing.assert_allclose(np.asarray(out), np.asarray(ref), rtol=1e-4, atol=1e-4)

    print("KERNEL_OK")
</pallas_src>

<mosaic_0001>
module attributes {stable_mosaic.version = 11 : i64} {
  func.func @_fused_attention_kernel(%arg0: i32, %arg1: memref<2x8x32xf32, #tpu.memory_space<vmem>>, %arg2: memref<32x32xf32, #tpu.memory_space<vmem>>, %arg3: memref<1x32xf32, #tpu.memory_space<vmem>>, %arg4: memref<2x32xf32, #tpu.memory_space<vmem>>) attributes {dimension_semantics = [#tpu.dimension_semantics<arbitrary>], iteration_bounds = array<i64: 1>, scalar_prefetch = 0 : i64, scratch_operands = 0 : i64, tpu.core_type = #tpu.core_type<tc>, window_params = [{pipeline_mode = #tpu.pipeline_mode<synchronous>, transform_indices = @transform_0, window_bounds = array<i64: 2, 8, 32>}, {pipeline_mode = #tpu.pipeline_mode<synchronous>, transform_indices = @transform_1, window_bounds = array<i64: 32, 32>}, {pipeline_mode = #tpu.pipeline_mode<synchronous>, transform_indices = @transform_2, window_bounds = array<i64: 1, 32>}, {pipeline_mode = #tpu.pipeline_mode<synchronous>, transform_indices = @transform_3, window_bounds = array<i64: 2, 32>}]} {
    %c0 = arith.constant 0 : index
    %c0_0 = arith.constant 0 : index
    %c0_1 = arith.constant 0 : index
    %0 = vector.load %arg1[%c0, %c0_0, %c0_1] : memref<2x8x32xf32, #tpu.memory_space<vmem>>, vector<2x8x32xf32>
    %cst = arith.constant dense<0.000000e+00> : vector<2x32xf32>
    %1 = vector.multi_reduction <add>, %0, %cst [1] : vector<2x8x32xf32> to vector<2x32xf32>
    %c0_2 = arith.constant 0 : index
    %c0_3 = arith.constant 0 : index
    %2 = vector.load %arg2[%c0_2, %c0_3] : memref<32x32xf32, #tpu.memory_space<vmem>>, vector<32x32xf32>
    %cst_4 = arith.constant dense<0.000000e+00> : vector<2x32xf32>
    %3 = tpu.matmul %1, %2, %cst_4 {dimension_numbers = #tpu.dot_dimension_numbers<[1], [0], [0], [1], [0, 0, 1, 1], [], []>} : vector<2x32xf32>, vector<32x32xf32>, vector<2x32xf32> -> vector<2x32xf32>
    %c0_5 = arith.constant 0 : index
    %c0_6 = arith.constant 0 : index
    %4 = vector.load %arg3[%c0_5, %c0_6] : memref<1x32xf32, #tpu.memory_space<vmem>>, vector<1x32xf32>
    %5 = vector.broadcast %4 : vector<1x32xf32> to vector<2x32xf32>
    %6 = arith.addf %3, %5 : vector<2x32xf32>
    %c0_7 = arith.constant 0 : index
    %c0_8 = arith.constant 0 : index
    %7 = vector.load %arg4[%c0_7, %c0_8] : memref<2x32xf32, #tpu.memory_space<vmem>>, vector<2x32xf32>
    tpu.vector_store %arg4[%c0_7, %c0_8], %6 {strides = array<i32>} : memref<2x32xf32, #tpu.memory_space<vmem>>, vector<2x32xf32>,
    return
  }
  func.func @transform_0(%arg0: i32) -> (i32, i32, i32) {
    %c0_i32 = arith.constant 0 : i32
    %c0_i32_0 = arith.constant 0 : i32
    %c0_i32_1 = arith.constant 0 : i32
    %c0_i32_2 = arith.constant 0 : i32
    return %c0_i32, %c0_i32_0, %c0_i32_1 : i32, i32, i32
  }
  func.func @transform_1(%arg0: i32) -> (i32, i32) {
    %c0_i32 = arith.constant 0 : i32
    %c0_i32_0 = arith.constant 0 : i32
    %c0_i32_1 = arith.constant 0 : i32
    return %c0_i32, %c0_i32_0 : i32, i32
  }
  func.func @transform_2(%arg0: i32) -> (i32, i32) {
    %c0_i32 = arith.constant 0 : i32
    %c0_i32_0 = arith.constant 0 : i32
    %c0_i32_1 = arith.constant 0 : i32
    return %c0_i32, %c0_i32_0 : i32, i32
  }
  func.func @transform_3(%arg0: i32) -> (i32, i32) {
    %c0_i32 = arith.constant 0 : i32
    %c0_i32_0 = arith.constant 0 : i32
    %c0_i32_1 = arith.constant 0 : i32
    return %c0_i32, %c0_i32_0 : i32, i32
  }
}

</mosaic_0001>

<bundles_post_ra>
// kernel: tpu_custom_call.1
= control target key start
LH: loop header
LB: loop body
LE: loop exit
PB: predicated region body
PF: predicated region fallthrough
CT: control target
= control target key end

     0   :  { %8 = vsyncpa [#allocation3], 0  ;;  %s339_s0 = inlined_call_operand.hbm [shape: f32[2,8,32], index: 0, kind: input, shape index: {}]   ;;  %s340_s1 = inlined_call_operand.hbm [shape: f32[32,32], index: 1, kind: input, shape index: {}]   ;;  %s341_s2 = inlined_call_operand.vmem [shape: f32[1,32], index: 2, kind: input, shape index: {}]   ;;  %s342_s3 = inlined_call_operand.hbm [shape: f32[2,32], index: 3, kind: output, shape index: {}]  }
   0x1   :  { %9 = vsyncpa [#allocation6], 0 }
   0x2   :  { %10 = vsyncpa [#allocation4], 0  ;;  %s269_s12 = smov [#allocation2]   ;;  %s197_s16 = scalar_lea.hbm %s339_s0, 256 }
   0x3   :  { %s16_s13 = sshll.u32 %s269_s12, 4  ;;  %p198_p0 = scmp.ne.s32.totalorder %s339_s0, %s197_s16  ;;  %s17_s13 = int_to_ptr.vmem [resolvable:$true] %s16_s13 }
   0x4   :  { %p201_p1 = scmp.lt.u32.totalorder %s197_s16, %s339_s0 }
   0x6   :  { %p203_p2 = pnand %p201_p1, %p198_p0 }
   0x8   :  { %206 = shalt.err (!%p203_p2)
}
   0x9   :  { %s207_s21 = scalar_lea.vmem %s17_s13, 256  ;;  %p212_p4 = scmp.lt.s32.totalorder %s17_s13, %s17_s13 }
   0xa   :  { %p208_p3 = scmp.ne.s32.totalorder %s17_s13, %s207_s21  ;;  %p213_p5 = scmp.lt.s32.totalorder %s207_s21, %s207_s21 }
   0xc   :  { %p214_p6 = por %p213_p5, %p212_p4 }
   0xe   :  { %p215_p7 = pnand %p214_p6, %p208_p3 }
  0x10   :  { %218 = shalt.err (!%p215_p7)
}
  0x11   :  { %s270_s22 = smov 128   ;;  %s271_s23 = smov 8  }
  0x12   :  { %22 = dma.hbm_to_vmem [thread:$0]  %s339_s0, 256, %s17_s13, [#allocation3], %s270_s22, %s270_s22, %s271_s23  }
  0x13   :  { %s272_s26 = smov [#allocation5]   ;;  %s219_s30 = scalar_lea.hbm %s340_s1, 512 }
  0x14   :  { %s28_s27 = sshll.u32 %s272_s26, 4  ;;  %p220_p8 = scmp.ne.s32.totalorder %s340_s1, %s219_s30  ;;  %s29_s27 = int_to_ptr.vmem [resolvable:$true] %s28_s27 }
  0x15   :  { %p223_p9 = scmp.lt.u32.totalorder %s219_s30, %s340_s1 }
  0x17   :  { %p225_p10 = pnand %p223_p9, %p220_p8 }
  0x19   :  { %228 = shalt.err (!%p225_p10)
}
  0x1a   :  { %s229_s8 = scalar_lea.vmem %s29_s27, 512  ;;  %p234_p12 = scmp.lt.s32.totalorder %s29_s27, %s29_s27 }
  0x1b   :  { %p230_p11 = scmp.ne.s32.totalorder %s29_s27, %s229_s8  ;;  %p235_p13 = scmp.lt.s32.totalorder %s229_s8, %s229_s8 }
  0x1d   :  { %p236_p0 = por %p235_p13, %p234_p12 }
  0x1f   :  { %p237_p1 = pnand %p236_p0, %p230_p11 }
  0x21   :  { %240 = shalt.err (!%p237_p1)
}
  0x22   :  { %34 = dma.hbm_to_vmem [thread:$0]  %s340_s1, 512, %s29_s27, [#allocation6], %s270_s22, %s270_s22, %s271_s23  }
  0x23   :  { %263 = dma.done.wait [#allocation3], 256  }
  0x24   :  { %264 = vsyncadd [#allocation3], 4294967040 }
  0x25   :  { %265 = dma.done.wait [#allocation6], 512  }
  0x26   :  { %266 = vsyncadd [#allocation6], 4294966784  ;;  %v273_v0 = vmov 0.0|0.0   ;;  %vm274_vm0 = vmmov 0   ;;  %v275_v1 = vmov 0.0   ;;  %vm45_vm1 = vcmask 261120  }
  0x27   :  { %183 = vmatprep.subr.bf16.mxu0 %v273_v0  ;;  %180 = vmatprep.mubr.msk.f32.mxu0 %vm274_vm0, %v275_v1  ;;  %v60_v2 = vld [vmem:[#allocation5] sm:$0xff]  ;;  %v61_v3 = vld [vmem:[#allocation5 + $0x8] sm:$0xff]  ;;  %v62_v4 = vld [vmem:[#allocation5 + $0x10] sm:$0xff]  ;;  %vm73_vm2 = vcmask 1041409   ;;  %s276_s11 = smov [#allocation7]   ;;  %vm147_vm3 = vcmask 254976  }
  0x28   :  { %v184_v5 = vpack.c.bf16 %v61_v3, %v60_v2  ;;  %v63_v6 = vld [vmem:[#allocation5 + $0x18] sm:$0xff]  ;;  %v43_v7 = vld [vmem:[#allocation2] sm:$0xff]  ;;  %s155_s12 = sshll.u32 %s276_s11, 4  ;;  %s156_s12 = int_to_ptr.vmem [resolvable:$true] %s155_s12 }
  0x29   :  { %v44_v8 = vld [vmem:[#allocation2 + $0x8] sm:$0xff]  ;;  %v46_v9 = vsel %vm45_vm1, %v43_v7, 0.0  ;;  %v187_v11 = vpack.c.bf16 %v63_v6, %v62_v4  ;;  %v165_v25 = vld [vmem:[%s341_s2] ss:$0 sm:$0xff]  ;;  %s241_s13 = scalar_lea.vmem %s156_s12, 32  ;;  %p246_p3 = scmp.lt.s32.totalorder %s156_s12, %s156_s12 }
  0x2a   :  { %v53_v10 = vsel %vm45_vm1, %v44_v8, 0.0  ;;  %185 = vmatpush3.bf16.msra.mxu0 %v184_v5  ;;  %v47_v12 = vrot.slane %v46_v9, 4  ;;  %p242_p2 = scmp.ne.s32.totalorder %s156_s12, %s241_s13  ;;  %p247_p4 = scmp.lt.s32.totalorder %s241_s13, %s241_s13 }
  0x2b   :  { %v54_v13 = vrot.slane %v53_v10, 4  ;;  %186 = vmatprep.subr.bf16.mxu0 %v273_v0 }
  0x2c   :  { %v48_v14 = vadd.f32 %v47_v12, %v46_v9  ;;  %p248_p5 = por %p247_p4, %p246_p3 }
  0x2d   :  { %v55_v15 = vadd.f32 %v54_v13, %v53_v10 }
  0x2e   :  { %188 = vmatpush3.bf16.msra.mxu0 %v187_v11  ;;  %v49_v16 = vrot.slane %v48_v14, 2  ;;  %p249_p6 = pnand %p248_p5, %p242_p2 }
  0x2f   :  { %v56_v17 = vrot.slane %v55_v15, 2 }
  0x30   :  { %v50_v18 = vadd.f32 %v49_v16, %v48_v14 }
  0x31   :  { %v57_v19 = vadd.f32 %v56_v17, %v55_v15 }
  0x32   :  { %v51_v20 = vrot.slane %v50_v18, 1 }
  0x33   :  { %v58_v21 = vrot.slane %v57_v19, 1 }
  0x34   :  { %v52_v22 = vadd.f32 %v51_v20, %v50_v18 }
  0x35   :  { %v59_v23 = vadd.f32 %v58_v21, %v57_v19 }
  0x37   :  { %v74_v24 = vsel %vm73_vm2, %v59_v23, %v52_v22 }
  0x38   :  { %181 = vmatmul.mubr.msk.f32.vlgmr.msra.gmra.mrb[0].mxu0 %vm45_vm1, %v74_v24 }
 0x10b   :  { %v143_v26 = vpop.f32.mrb[0].mxu0 }
 0x10c   :  { %v144_v27 = vadd.f32 %v165_v25, %v143_v26  ;;  %v182_v28 = vpop.f32.mrb[1].mxu0 }
 0x10e   :  { %148 = vst.msk [vmem:[#allocation7] sm:$0x3] %vm147_vm3, %v144_v27 }
 0x10f   :  { %252 = shalt.err (!%p249_p6)
}
 0x110   :  { %s253_s16 = scalar_lea.hbm %s342_s3, 32 }
 0x111   :  { %p254_p7 = scmp.ne.s32.totalorder %s342_s3, %s253_s16  ;;  %p257_p8 = scmp.lt.u32.totalorder %s253_s16, %s342_s3 }
 0x113   :  { %p259_p9 = pnand %p257_p8, %p254_p7 }
 0x115   :  { %262 = shalt.err (!%p259_p9)
}
 0x116   :  { %158 = dma.vmem_to_hbm [thread:$0]  %s156_s12, 32, %s342_s3, [#allocation4]  }
 0x117   :  { %267 = dma.done.wait [#allocation4], 32  }
 0x118   :  { %268 = vsyncadd [#allocation4], 4294967264 }
 0x119   :  { %162 = vsyncpa [#allocation3], 1 }
 0x11a   :  { %163 = vsyncpa [#allocation6], 1 }
 0x11b   :  { %164 = vsyncpa [#allocation4], 1 }

</bundles_post_ra>
